<compile_context>
chip_gen: v7x
topology: tpu7x:2x2x1
jax: 0.10.0
libtpu: 0.0.40
codegen_flags: <defaults>
</compile_context>

<pallas_src>
import functools
import math

import jax
import jax.numpy as jnp
from jax.experimental import pallas as pl
from jax.experimental.pallas import tpu as pltpu


def _clip_attention_kernel(x_ref, wqkv_ref, bqkv_ref, wo_ref, bo_ref, *rest,
                           heads_per_group, head_dim, seq_len, needs_pad_mask,
                           has_mask, compute_dtype):
    if has_mask:
        mask_ref, out_ref = rest
    else:
        (out_ref,) = rest

    cdt = compute_dtype
    Dg = heads_per_group * head_dim

    x = x_ref[0]                                        # (Sp, E), compute dtype
    Sp = x.shape[0]

    # Fused QKV projection for this head group: one wide MXU matmul, f32 acc.
    qkv = jnp.dot(x, wqkv_ref[0], preferred_element_type=jnp.float32)
    qkv = qkv + bqkv_ref[0]                             # (Sp, 3*Dg) f32

    scale = 1.0 / math.sqrt(head_dim)
    q = (qkv[:, 0:Dg] * scale).astype(cdt)              # scale folded into q once
    k = qkv[:, Dg:2 * Dg].astype(cdt)
    v = qkv[:, 2 * Dg:3 * Dg].astype(cdt)

    bias = None
    if has_mask:
        bias = mask_ref[0]                              # (Sp, Sp) additive, f32
    if needs_pad_mask:
        # Pad-key bias generated in-kernel (no HBM mask traffic for padding).
        key_idx = jax.lax.broadcasted_iota(jnp.int32, (1, Sp), 1)
        pad_bias = jnp.where(key_idx < seq_len, 0.0, -1e9).astype(jnp.float32)
        bias = pad_bias if bias is None else bias + pad_bias

    ctxs = []
    for h in range(heads_per_group):
        lo = h * head_dim
        hi = lo + head_dim
        qh = q[:, lo:hi]                                # (Sp, D)
        kh = k[:, lo:hi]                                # (Sp, D)
        vh = v[:, lo:hi]                                # (Sp, D)

        # q @ k^T without a materialized transpose: contract over D directly.
        s = jax.lax.dot_general(qh, kh, (((1,), (1,)), ((), ())),
                                preferred_element_type=jnp.float32)  # (Sp, Sp)
        if bias is not None:
            s = s + bias
        s = s - jnp.max(s, axis=-1, keepdims=True)
        p = jnp.exp(s)
        inv = pl.reciprocal(jnp.sum(p, axis=-1, keepdims=True), approx=True)
        p = (p * inv).astype(cdt)
        ctxs.append(jnp.dot(p, vh, preferred_element_type=jnp.float32))  # (Sp, D)

    # Assemble the whole group context once and run a single K=Dg output
    # projection (better MXU contraction fill than per-head K=head_dim matmuls).
    ctx = ctxs[0] if len(ctxs) == 1 else jnp.concatenate(ctxs, axis=-1)  # (Sp, Dg)
    out = jnp.dot(ctx.astype(cdt), wo_ref[0],
                  preferred_element_type=jnp.float32) + bo_ref[0]        # (Sp, E)
    out_ref[0, 0] = out.astype(out_ref.dtype)           # single lane-dense store


def prepack_clip_attention_params(params, heads, head_groups=1,
                                  compute_dtype=jnp.bfloat16):
    """One-time weight packing. Call at model init, NOT per forward call.

    params: torch-style Linear weights (out, in) and biases for q/k/v/out.
    head_groups: number of head groups (use 2 at batch==1 on v7x so both
      TensorCores get work; 1 otherwise).
    """
    q_w = jnp.asarray(params["q_w"])
    k_w = jnp.asarray(params["k_w"])
    v_w = jnp.asarray(params["v_w"])
    o_w = jnp.asarray(params["o_w"])
    q_b = jnp.asarray(params["q_b"])
    k_b = jnp.asarray(params["k_b"])
    v_b = jnp.asarray(params["v_b"])
    o_b = jnp.asarray(params["o_b"])

    E = q_w.shape[0]
    assert E % heads == 0
    D = E // heads
    assert D % 8 == 0 or E < 128, "head_dim should be a multiple of 8"
    assert heads % head_groups == 0
    hpg = heads // head_groups
    Dg = hpg * D

    wq_t, wk_t, wv_t, wo_t = q_w.T, k_w.T, v_w.T, o_w.T   # (E, E), x @ W layout

    wqkv, bqkv, wo, bo = [], [], [], []
    for g in range(head_groups):
        lo, hi = g * Dg, (g + 1) * Dg
        wqkv.append(jnp.concatenate(
            [wq_t[:, lo:hi], wk_t[:, lo:hi], wv_t[:, lo:hi]], axis=1))
        bqkv.append(jnp.concatenate([q_b[lo:hi], k_b[lo:hi], v_b[lo:hi]]))
        wo.append(wo_t[lo:hi, :])
        # Output bias is added exactly once (in group 0), so the group-sum is exact.
        bo.append(o_b if g == 0 else jnp.zeros_like(o_b))

    return {
        "wqkv": jnp.stack(wqkv).astype(compute_dtype),            # (G, E, 3*Dg)
        "bqkv": jnp.stack(bqkv)[:, None, :].astype(jnp.float32),  # (G, 1, 3*Dg)
        "wo": jnp.stack(wo).astype(compute_dtype),                # (G, Dg, E)
        "bo": jnp.stack(bo)[:, None, :].astype(jnp.float32),      # (G, 1, E)
        "heads": heads, "head_groups": head_groups, "head_dim": D,
        "embed_dim": E, "compute_dtype": compute_dtype,
    }


def clip_attention(x, packed, mask=None, out_dtype=None):
    """x: (B, S, E). packed: result of prepack_clip_attention_params().

    mask: optional additive attention mask, shape (S,S), (B,S,S) or (B,1,S,S).
    """
    B, S, E = x.shape
    assert E == packed["embed_dim"]
    H = packed["heads"]
    G = packed["head_groups"]
    D = packed["head_dim"]
    hpg = H // G
    Dg = hpg * D
    cdt = packed["compute_dtype"]
    out_dtype = x.dtype if out_dtype is None else out_dtype

    # Pad S up to a multiple of 8 so all tiles are sublane-aligned.
    Sp = ((S + 7) // 8) * 8
    pad = Sp - S
    has_mask = mask is not None

    xp = x
    if pad > 0:
        xp = jnp.pad(x, ((0, 0), (0, pad), (0, 0)))
    xp = xp.astype(cdt)

    mask_args = ()
    if has_mask:
        m = jnp.asarray(mask, jnp.float32)
        if m.ndim == 2:
            m = m[None]
        elif m.ndim == 4:
            assert m.shape[1] == 1, "per-head attention masks are not supported"
            m = m[:, 0]
        assert m.ndim == 3
        m = jnp.broadcast_to(m, (B, S, S))
        if pad > 0:
            # Pad keys are masked in-kernel (needs_pad_mask), pad queries sliced off.
            m = jnp.pad(m, ((0, 0), (0, pad), (0, pad)))
        mask_args = (m,)

    # Per-head-group partial outputs; summed below (exactly) when G > 1.
    partial_dtype = jnp.float32 if G > 1 else out_dtype

    kernel = functools.partial(
        _clip_attention_kernel, heads_per_group=hpg, head_dim=D, seq_len=S,
        needs_pad_mask=(pad > 0), has_mask=has_mask, compute_dtype=cdt)

    def _weight_spec(shape, index_map):
        # Grid-invariant weights (G == 1): single-buffer them — double-buffering
        # a constant operand is pure VMEM waste (critical at bigG on v7x).
        if G == 1:
            try:
                return pl.BlockSpec(shape, index_map, pipeline_mode=pl.Buffered(1))
            except TypeError:  # older jax without pipeline_mode support
                pass
        return pl.BlockSpec(shape, index_map)

    in_specs = [
        pl.BlockSpec((1, Sp, E), lambda b, g: (b, 0, 0)),         # x
        _weight_spec((1, E, 3 * Dg), lambda b, g: (g, 0, 0)),     # wqkv (bf16)
        _weight_spec((1, 1, 3 * Dg), lambda b, g: (g, 0, 0)),     # bqkv (f32)
        _weight_spec((1, Dg, E), lambda b, g: (g, 0, 0)),         # wo   (bf16)
        _weight_spec((1, 1, E), lambda b, g: (g, 0, 0)),          # bo   (f32)
    ]
    if has_mask:
        in_specs.append(pl.BlockSpec((1, Sp, Sp), lambda b, g: (b, 0, 0)))

    # --- cost estimate + VMEM sizing (generation-aware) ---------------------
    dbytes = lambda dt: jnp.dtype(dt).itemsize
    cdt_b = dbytes(cdt)
    w_bytes = (packed["wqkv"].size * cdt_b + packed["bqkv"].size * 4 +
               packed["wo"].size * cdt_b + packed["bo"].size * 4)
    io_bytes = (xp.size * cdt_b + B * G * Sp * E * dbytes(partial_dtype) +
                (B * Sp * Sp * 4 if has_mask else 0))
    flops = (2 * B * Sp * E * 3 * E          # fused QKV projection
             + 4 * B * H * Sp * Sp * D       # scores + context
             + 2 * B * Sp * E * E)           # output projection
    cost = pl.CostEstimate(flops=int(flops),
                           transcendentals=int(B * H * Sp * Sp),
                           bytes_accessed=int(w_bytes + io_bytes))

    wbuf = 1 if G == 1 else 2
    vmem_est = (wbuf * (w_bytes // G)                      # per-group weights
                + 2 * Sp * E * cdt_b                       # x block (dbl-buf)
                + 2 * Sp * E * dbytes(partial_dtype)       # out block (dbl-buf)
                + (2 * Sp * Sp * 4 if has_mask else 0)     # mask block
                + 4 * Sp * max(3 * Dg, E) * 4)             # in-kernel f32 temps
    try:
        phys_vmem = pltpu.get_tpu_info().vmem_capacity_bytes
    except Exception:
        phys_vmem = 64 * 1024 * 1024      # v7x has the smallest per-TC VMEM
    vmem_limit = int(min(max(2 * vmem_est, 16 * 1024 * 1024),
                         int(0.75 * phys_vmem)))

    out = pl.pallas_call(
        kernel,
        out_shape=jax.ShapeDtypeStruct((B, G, Sp, E), partial_dtype),
        grid_spec=pltpu.PrefetchScalarGridSpec(
            num_scalar_prefetch=0,
            grid=(B, G),
            in_specs=in_specs,
            out_specs=pl.BlockSpec((1, 1, Sp, E), lambda b, g: (b, g, 0, 0)),
        ),
        compiler_params=pltpu.CompilerParams(
            dimension_semantics=("parallel", "parallel"),
            vmem_limit_bytes=vmem_limit),
        cost_estimate=cost,
    )(xp, packed["wqkv"], packed["bqkv"], packed["wo"], packed["bo"], *mask_args)

    if G > 1:
        out = jnp.sum(out, axis=1).astype(out_dtype)
    else:
        out = out[:, 0]
    if pad > 0:
        out = out[:, :S, :]
    return out


def clip_attention_ref(x, params, heads, mask=None):
    """Pure-JAX f32 reference matching the PyTorch module semantics."""
    B, S, E = x.shape
    D = E // heads
    q = x @ params["q_w"].T + params["q_b"]
    k = x @ params["k_w"].T + params["k_b"]
    v = x @ params["v_w"].T + params["v_b"]
    rs = lambda t: t.reshape(B, S, heads, D).transpose(0, 2, 1, 3)
    qh, kh, vh = rs(q), rs(k), rs(v)
    s = jnp.einsum("bhqd,bhkd->bhqk", qh, kh) / math.sqrt(D)
    if mask is not None:
        s = s + mask
    p = jax.nn.softmax(s, axis=-1)
    o = jnp.einsum("bhqk,bhkd->bhqd", p, vh)
    o = o.transpose(0, 2, 1, 3).reshape(B, S, E)
    return o @ params["o_w"].T + params["o_b"]


if __name__ == "__main__":
    E, H = 32, 4

    key = jax.random.PRNGKey(0)
    keys = jax.random.split(key, 11)
    params = {
        "q_w": 0.05 * jax.random.normal(keys[0], (E, E), jnp.float32),
        "q_b": 0.05 * jax.random.normal(keys[1], (E,), jnp.float32),
        "k_w": 0.05 * jax.random.normal(keys[2], (E, E), jnp.float32),
        "k_b": 0.05 * jax.random.normal(keys[3], (E,), jnp.float32),
        "v_w": 0.05 * jax.random.normal(keys[4], (E, E), jnp.float32),
        "v_b": 0.05 * jax.random.normal(keys[5], (E,), jnp.float32),
        "o_w": 0.05 * jax.random.normal(keys[6], (E, E), jnp.float32),
        "o_b": 0.05 * jax.random.normal(keys[7], (E,), jnp.float32),
    }

    # One-time weight packing (done at "model init", not per call).
    packed_g1 = prepack_clip_attention_params(params, heads=H, head_groups=1)
    packed_g2 = prepack_clip_attention_params(params, heads=H, head_groups=2)

    # Case 1: no mask, S already a multiple of 8, single head group.
    B1, S1 = 2, 8
    x1 = jax.random.normal(keys[8], (B1, S1, E), jnp.float32)
    out1 = jax.block_until_ready(clip_attention(x1, packed_g1, mask=None))
    ref1 = clip_attention_ref(x1, params, heads=H, mask=None)
    assert out1.shape == (B1, S1, E)
    assert jnp.allclose(out1, ref1, atol=2e-2, rtol=2e-2), "mismatch (no mask)"

    # Case 2: causal additive mask + ragged S (exercises in-kernel pad masking).
    B2, S2 = 2, 7
    x2 = jax.random.normal(keys[9], (B2, S2, E), jnp.float32)
    causal = jnp.where(
        jnp.arange(S2)[:, None] >= jnp.arange(S2)[None, :], 0.0, -1e9
    ).astype(jnp.float32)
    out2 = jax.block_until_ready(clip_attention(x2, packed_g1, mask=causal))
    ref2 = clip_attention_ref(x2, params, heads=H, mask=causal)
    assert out2.shape == (B2, S2, E)
    assert jnp.allclose(out2, ref2, atol=2e-2, rtol=2e-2), "mismatch (causal mask)"

    # Case 3: batch 1 with two head groups (v7x dual-TensorCore path) + mask.
    B3, S3 = 1, 7
    x3 = jax.random.normal(keys[10], (B3, S3, E), jnp.float32)
    out3 = jax.block_until_ready(clip_attention(x3, packed_g2, mask=causal))
    ref3 = clip_attention_ref(x3, params, heads=H, mask=causal)
    assert out3.shape == (B3, S3, E)
    assert jnp.allclose(out3, ref3, atol=2e-2, rtol=2e-2), "mismatch (head groups)"

    print("KERNEL_OK")
</pallas_src>

<mosaic_0001>
module attributes {stable_mosaic.version = 11 : i64} {
  func.func @_clip_attention_kernel(%arg0: i32, %arg1: i32, %arg2: memref<1x8x32xbf16, #tpu.memory_space<vmem>>, %arg3: memref<1x32x96xbf16, #tpu.memory_space<vmem>>, %arg4: memref<1x1x96xf32, #tpu.memory_space<vmem>>, %arg5: memref<1x32x32xbf16, #tpu.memory_space<vmem>>, %arg6: memref<1x1x32xf32, #tpu.memory_space<vmem>>, %arg7: memref<1x1x8x32xf32, #tpu.memory_space<vmem>>) attributes {dimension_semantics = [#tpu.dimension_semantics<parallel>, #tpu.dimension_semantics<parallel>], iteration_bounds = array<i64: 2, 1>, scalar_prefetch = 0 : i64, scratch_operands = 0 : i64, tpu.core_type = #tpu.core_type<tc>, window_params = [{transform_indices = @transform_0, window_bounds = array<i64: 1, 8, 32>}, {pipeline_mode = #tpu.pipeline_mode<synchronous>, transform_indices = @transform_1, window_bounds = array<i64: 1, 32, 96>}, {pipeline_mode = #tpu.pipeline_mode<synchronous>, transform_indices = @transform_2, window_bounds = array<i64: 1, 1, 96>}, {pipeline_mode = #tpu.pipeline_mode<synchronous>, transform_indices = @transform_3, window_bounds = array<i64: 1, 32, 32>}, {pipeline_mode = #tpu.pipeline_mode<synchronous>, transform_indices = @transform_4, window_bounds = array<i64: 1, 1, 32>}, {transform_indices = @transform_5, window_bounds = array<i64: 1, 1, 8, 32>}]} {
    %c0 = arith.constant 0 : index
    %c0_0 = arith.constant 0 : index
    %c0_1 = arith.constant 0 : index
    %0 = vector.load %arg2[%c0, %c0_0, %c0_1] : memref<1x8x32xbf16, #tpu.memory_space<vmem>>, vector<1x8x32xbf16>
    %1 = vector.shape_cast %0 : vector<1x8x32xbf16> to vector<8x32xbf16>
    %c0_2 = arith.constant 0 : index
    %c0_3 = arith.constant 0 : index
    %c0_4 = arith.constant 0 : index
    %2 = vector.load %arg3[%c0_2, %c0_3, %c0_4] : memref<1x32x96xbf16, #tpu.memory_space<vmem>>, vector<1x32x96xbf16>
    %3 = vector.shape_cast %2 : vector<1x32x96xbf16> to vector<32x96xbf16>
    %cst = arith.constant dense<0.000000e+00> : vector<8x96xf32>
    %4 = tpu.matmul %1, %3, %cst {dimension_numbers = #tpu.dot_dimension_numbers<[1], [0], [0], [1], [0, 0, 1, 1], [], []>} : vector<8x32xbf16>, vector<32x96xbf16>, vector<8x96xf32> -> vector<8x96xf32>
    %c0_5 = arith.constant 0 : index
    %c0_6 = arith.constant 0 : index
    %c0_7 = arith.constant 0 : index
    %5 = vector.load %arg4[%c0_5, %c0_6, %c0_7] : memref<1x1x96xf32, #tpu.memory_space<vmem>>, vector<1x1x96xf32>
    %6 = vector.shape_cast %5 : vector<1x1x96xf32> to vector<1x96xf32>
    %7 = vector.broadcast %6 : vector<1x96xf32> to vector<8x96xf32>
    %8 = arith.addf %4, %7 : vector<8x96xf32>
    %9 = vector.extract_strided_slice %8 {offsets = [0, 0], sizes = [8, 32], strides = [1, 1]} : vector<8x96xf32> to vector<8x32xf32>
    %cst_8 = arith.constant 0.353553385 : f32
    %10 = vector.broadcast %cst_8 : f32 to vector<8x32xf32>
    %11 = arith.mulf %9, %10 : vector<8x32xf32>
    %12 = arith.truncf %11 : vector<8x32xf32> to vector<8x32xbf16>
    %13 = vector.extract_strided_slice %8 {offsets = [0, 32], sizes = [8, 32], strides = [1, 1]} : vector<8x96xf32> to vector<8x32xf32>
    %14 = arith.truncf %13 : vector<8x32xf32> to vector<8x32xbf16>
    %15 = vector.extract_strided_slice %8 {offsets = [0, 64], sizes = [8, 32], strides = [1, 1]} : vector<8x96xf32> to vector<8x32xf32>
    %16 = arith.truncf %15 : vector<8x32xf32> to vector<8x32xbf16>
    %17 = vector.extract_strided_slice %12 {offsets = [0, 0], sizes = [8, 8], strides = [1, 1]} : vector<8x32xbf16> to vector<8x8xbf16>
    %18 = vector.extract_strided_slice %14 {offsets = [0, 0], sizes = [8, 8], strides = [1, 1]} : vector<8x32xbf16> to vector<8x8xbf16>
    %19 = vector.extract_strided_slice %16 {offsets = [0, 0], sizes = [8, 8], strides = [1, 1]} : vector<8x32xbf16> to vector<8x8xbf16>
    %cst_9 = arith.constant dense<0.000000e+00> : vector<8x8xf32>
    %20 = tpu.matmul %17, %18, %cst_9 {dimension_numbers = #tpu.dot_dimension_numbers<[1], [1], [0], [0], [0, 0, 1, 0], [], []>} : vector<8x8xbf16>, vector<8x8xbf16>, vector<8x8xf32> -> vector<8x8xf32>
    %cst_10 = arith.constant dense<0xFF800000> : vector<8xf32>
    %21 = vector.multi_reduction <maximumf>, %20, %cst_10 [1] : vector<8x8xf32> to vector<8xf32>
    %22 = vector.shape_cast %21 : vector<8xf32> to vector<8x1xf32>
    %23 = vector.broadcast %22 : vector<8x1xf32> to vector<8x8xf32>
    %24 = arith.subf %20, %23 : vector<8x8xf32>
    %25 = math.exp %24 : vector<8x8xf32>
    %cst_11 = arith.constant dense<0.000000e+00> : vector<8xf32>
    %26 = vector.multi_reduction <add>, %25, %cst_11 [1] : vector<8x8xf32> to vector<8xf32>
    %27 = vector.shape_cast %26 : vector<8xf32> to vector<8x1xf32>
    %28 = tpu.reciprocal %27 {approx = true} : vector<8x1xf32> -> vector<8x1xf32>
    %29 = vector.broadcast %28 : vector<8x1xf32> to vector<8x8xf32>
    %30 = arith.mulf %25, %29 : vector<8x8xf32>
    %31 = arith.truncf %30 : vector<8x8xf32> to vector<8x8xbf16>
    %cst_12 = arith.constant dense<0.000000e+00> : vector<8x8xf32>
    %32 = tpu.matmul %31, %19, %cst_12 {dimension_numbers = #tpu.dot_dimension_numbers<[1], [0], [0], [1], [0, 0, 1, 1], [], []>} : vector<8x8xbf16>, vector<8x8xbf16>, vector<8x8xf32> -> vector<8x8xf32>
    %33 = vector.extract_strided_slice %12 {offsets = [0, 8], sizes = [8, 8], strides = [1, 1]} : vector<8x32xbf16> to vector<8x8xbf16>
    %34 = vector.extract_strided_slice %14 {offsets = [0, 8], sizes = [8, 8], strides = [1, 1]} : vector<8x32xbf16> to vector<8x8xbf16>
    %35 = vector.extract_strided_slice %16 {offsets = [0, 8], sizes = [8, 8], strides = [1, 1]} : vector<8x32xbf16> to vector<8x8xbf16>
    %cst_13 = arith.constant dense<0.000000e+00> : vector<8x8xf32>
    %36 = tpu.matmul %33, %34, %cst_13 {dimension_numbers = #tpu.dot_dimension_numbers<[1], [1], [0], [0], [0, 0, 1, 0], [], []>} : vector<8x8xbf16>, vector<8x8xbf16>, vector<8x8xf32> -> vector<8x8xf32>
    %cst_14 = arith.constant dense<0xFF800000> : vector<8xf32>
    %37 = vector.multi_reduction <maximumf>, %36, %cst_14 [1] : vector<8x8xf32> to vector<8xf32>
    %38 = vector.shape_cast %37 : vector<8xf32> to vector<8x1xf32>
    %39 = vector.broadcast %38 : vector<8x1xf32> to vector<8x8xf32>
    %40 = arith.subf %36, %39 : vector<8x8xf32>
    %41 = math.exp %40 : vector<8x8xf32>
    %cst_15 = arith.constant dense<0.000000e+00> : vector<8xf32>
    %42 = vector.multi_reduction <add>, %41, %cst_15 [1] : vector<8x8xf32> to vector<8xf32>
    %43 = vector.shape_cast %42 : vector<8xf32> to vector<8x1xf32>
    %44 = tpu.reciprocal %43 {approx = true} : vector<8x1xf32> -> vector<8x1xf32>
    %45 = vector.broadcast %44 : vector<8x1xf32> to vector<8x8xf32>
    %46 = arith.mulf %41, %45 : vector<8x8xf32>
    %47 = arith.truncf %46 : vector<8x8xf32> to vector<8x8xbf16>
    %cst_16 = arith.constant dense<0.000000e+00> : vector<8x8xf32>
    %48 = tpu.matmul %47, %35, %cst_16 {dimension_numbers = #tpu.dot_dimension_numbers<[1], [0], [0], [1], [0, 0, 1, 1], [], []>} : vector<8x8xbf16>, vector<8x8xbf16>, vector<8x8xf32> -> vector<8x8xf32>
    %49 = vector.extract_strided_slice %12 {offsets = [0, 16], sizes = [8, 8], strides = [1, 1]} : vector<8x32xbf16> to vector<8x8xbf16>
    %50 = vector.extract_strided_slice %14 {offsets = [0, 16], sizes = [8, 8], strides = [1, 1]} : vector<8x32xbf16> to vector<8x8xbf16>
    %51 = vector.extract_strided_slice %16 {offsets = [0, 16], sizes = [8, 8], strides = [1, 1]} : vector<8x32xbf16> to vector<8x8xbf16>
    %cst_17 = arith.constant dense<0.000000e+00> : vector<8x8xf32>
    %52 = tpu.matmul %49, %50, %cst_17 {dimension_numbers = #tpu.dot_dimension_numbers<[1], [1], [0], [0], [0, 0, 1, 0], [], []>} : vector<8x8xbf16>, vector<8x8xbf16>, vector<8x8xf32> -> vector<8x8xf32>
    %cst_18 = arith.constant dense<0xFF800000> : vector<8xf32>
    %53 = vector.multi_reduction <maximumf>, %52, %cst_18 [1] : vector<8x8xf32> to vector<8xf32>
    %54 = vector.shape_cast %53 : vector<8xf32> to vector<8x1xf32>
    %55 = vector.broadcast %54 : vector<8x1xf32> to vector<8x8xf32>
    %56 = arith.subf %52, %55 : vector<8x8xf32>
    %57 = math.exp %56 : vector<8x8xf32>
    %cst_19 = arith.constant dense<0.000000e+00> : vector<8xf32>
    %58 = vector.multi_reduction <add>, %57, %cst_19 [1] : vector<8x8xf32> to vector<8xf32>
    %59 = vector.shape_cast %58 : vector<8xf32> to vector<8x1xf32>
    %60 = tpu.reciprocal %59 {approx = true} : vector<8x1xf32> -> vector<8x1xf32>
    %61 = vector.broadcast %60 : vector<8x1xf32> to vector<8x8xf32>
    %62 = arith.mulf %57, %61 : vector<8x8xf32>
    %63 = arith.truncf %62 : vector<8x8xf32> to vector<8x8xbf16>
    %cst_20 = arith.constant dense<0.000000e+00> : vector<8x8xf32>
    %64 = tpu.matmul %63, %51, %cst_20 {dimension_numbers = #tpu.dot_dimension_numbers<[1], [0], [0], [1], [0, 0, 1, 1], [], []>} : vector<8x8xbf16>, vector<8x8xbf16>, vector<8x8xf32> -> vector<8x8xf32>
    %65 = vector.extract_strided_slice %12 {offsets = [0, 24], sizes = [8, 8], strides = [1, 1]} : vector<8x32xbf16> to vector<8x8xbf16>
    %66 = vector.extract_strided_slice %14 {offsets = [0, 24], sizes = [8, 8], strides = [1, 1]} : vector<8x32xbf16> to vector<8x8xbf16>
    %67 = vector.extract_strided_slice %16 {offsets = [0, 24], sizes = [8, 8], strides = [1, 1]} : vector<8x32xbf16> to vector<8x8xbf16>
    %cst_21 = arith.constant dense<0.000000e+00> : vector<8x8xf32>
    %68 = tpu.matmul %65, %66, %cst_21 {dimension_numbers = #tpu.dot_dimension_numbers<[1], [1], [0], [0], [0, 0, 1, 0], [], []>} : vector<8x8xbf16>, vector<8x8xbf16>, vector<8x8xf32> -> vector<8x8xf32>
    %cst_22 = arith.constant dense<0xFF800000> : vector<8xf32>
    %69 = vector.multi_reduction <maximumf>, %68, %cst_22 [1] : vector<8x8xf32> to vector<8xf32>
    %70 = vector.shape_cast %69 : vector<8xf32> to vector<8x1xf32>
    %71 = vector.broadcast %70 : vector<8x1xf32> to vector<8x8xf32>
    %72 = arith.subf %68, %71 : vector<8x8xf32>
    %73 = math.exp %72 : vector<8x8xf32>
    %cst_23 = arith.constant dense<0.000000e+00> : vector<8xf32>
    %74 = vector.multi_reduction <add>, %73, %cst_23 [1] : vector<8x8xf32> to vector<8xf32>
    %75 = vector.shape_cast %74 : vector<8xf32> to vector<8x1xf32>
    %76 = tpu.reciprocal %75 {approx = true} : vector<8x1xf32> -> vector<8x1xf32>
    %77 = vector.broadcast %76 : vector<8x1xf32> to vector<8x8xf32>
    %78 = arith.mulf %73, %77 : vector<8x8xf32>
    %79 = arith.truncf %78 : vector<8x8xf32> to vector<8x8xbf16>
    %cst_24 = arith.constant dense<0.000000e+00> : vector<8x8xf32>
    %80 = tpu.matmul %79, %67, %cst_24 {dimension_numbers = #tpu.dot_dimension_numbers<[1], [0], [0], [1], [0, 0, 1, 1], [], []>} : vector<8x8xbf16>, vector<8x8xbf16>, vector<8x8xf32> -> vector<8x8xf32>
    %81 = tpu.concatenate %32, %48, %64, %80 in 1 : vector<8x8xf32>, vector<8x8xf32>, vector<8x8xf32>, vector<8x8xf32> -> vector<8x32xf32>
    %82 = arith.truncf %81 : vector<8x32xf32> to vector<8x32xbf16>
    %c0_25 = arith.constant 0 : index
    %c0_26 = arith.constant 0 : index
    %c0_27 = arith.constant 0 : index
    %83 = vector.load %arg5[%c0_25, %c0_26, %c0_27] : memref<1x32x32xbf16, #tpu.memory_space<vmem>>, vector<1x32x32xbf16>
    %84 = vector.shape_cast %83 : vector<1x32x32xbf16> to vector<32x32xbf16>
    %cst_28 = arith.constant dense<0.000000e+00> : vector<8x32xf32>
    %85 = tpu.matmul %82, %84, %cst_28 {dimension_numbers = #tpu.dot_dimension_numbers<[1], [0], [0], [1], [0, 0, 1, 1], [], []>} : vector<8x32xbf16>, vector<32x32xbf16>, vector<8x32xf32> -> vector<8x32xf32>
    %c0_29 = arith.constant 0 : index
    %c0_30 = arith.constant 0 : index
    %c0_31 = arith.constant 0 : index
    %86 = vector.load %arg6[%c0_29, %c0_30, %c0_31] : memref<1x1x32xf32, #tpu.memory_space<vmem>>, vector<1x1x32xf32>
    %87 = vector.shape_cast %86 : vector<1x1x32xf32> to vector<1x32xf32>
    %88 = vector.broadcast %87 : vector<1x32xf32> to vector<8x32xf32>
    %89 = arith.addf %85, %88 : vector<8x32xf32>
    %c0_32 = arith.constant 0 : index
    %c0_33 = arith.constant 0 : index
    %c0_34 = arith.constant 0 : index
    %c0_35 = arith.constant 0 : index
    %90 = vector.load %arg7[%c0_32, %c0_33, %c0_34, %c0_35] : memref<1x1x8x32xf32, #tpu.memory_space<vmem>>, vector<1x1x8x32xf32>
    %91 = vector.shape_cast %90 : vector<1x1x8x32xf32> to vector<8x32xf32>
    %92 = vector.shape_cast %89 : vector<8x32xf32> to vector<1x1x8x32xf32>
    tpu.vector_store %arg7[%c0_32, %c0_33, %c0_34, %c0_35], %92 {strides = array<i32>} : memref<1x1x8x32xf32, #tpu.memory_space<vmem>>, vector<1x1x8x32xf32>,
    return
  }
  func.func @transform_0(%arg0: i32, %arg1: i32) -> (i32, i32, i32) {
    %c0_i32 = arith.constant 0 : i32
    %c0_i32_0 = arith.constant 0 : i32
    %c0_i32_1 = arith.constant 0 : i32
    return %arg0, %c0_i32, %c0_i32_0 : i32, i32, i32
  }
  func.func @transform_1(%arg0: i32, %arg1: i32) -> (i32, i32, i32) {
    %c0_i32 = arith.constant 0 : i32
    %c0_i32_0 = arith.constant 0 : i32
    %c0_i32_1 = arith.constant 0 : i32
    return %arg1, %c0_i32, %c0_i32_0 : i32, i32, i32
  }
  func.func @transform_2(%arg0: i32, %arg1: i32) -> (i32, i32, i32) {
    %c0_i32 = arith.constant 0 : i32
    %c0_i32_0 = arith.constant 0 : i32
    %c0_i32_1 = arith.constant 0 : i32
    return %arg1, %c0_i32, %c0_i32_0 : i32, i32, i32
  }
  func.func @transform_3(%arg0: i32, %arg1: i32) -> (i32, i32, i32) {
    %c0_i32 = arith.constant 0 : i32
    %c0_i32_0 = arith.constant 0 : i32
    %c0_i32_1 = arith.constant 0 : i32
    return %arg1, %c0_i32, %c0_i32_0 : i32, i32, i32
  }
  func.func @transform_4(%arg0: i32, %arg1: i32) -> (i32, i32, i32) {
    %c0_i32 = arith.constant 0 : i32
    %c0_i32_0 = arith.constant 0 : i32
    %c0_i32_1 = arith.constant 0 : i32
    return %arg1, %c0_i32, %c0_i32_0 : i32, i32, i32
  }
  func.func @transform_5(%arg0: i32, %arg1: i32) -> (i32, i32, i32, i32) {
    %c0_i32 = arith.constant 0 : i32
    %c0_i32_0 = arith.constant 0 : i32
    %c0_i32_1 = arith.constant 0 : i32
    return %arg0, %arg1, %c0_i32, %c0_i32_0 : i32, i32, i32, i32
  }
}

</mosaic_0001>

<bundles_post_ra>
// kernel: tpu_custom_call.1
= control target key start
LH: loop header
LB: loop body
LE: loop exit
PB: predicated region body
PF: predicated region fallthrough
CT: control target
= control target key end

     0   :  { %10 = vsyncpa [#allocation3], 0  ;;  %s1862_s0 = inlined_call_operand.hbm [shape: bf16[2,8,32], index: 0, kind: input, shape index: {}]   ;;  %s1863_s1 = inlined_call_operand.hbm [shape: bf16[1,32,96], index: 1, kind: input, shape index: {}]   ;;  %s1864_s2 = inlined_call_operand.vmem [shape: f32[1,1,96], index: 2, kind: input, shape index: {}]   ;;  %s1865_s3 = inlined_call_operand.hbm [shape: bf16[1,32,32], index: 3, kind: input, shape index: {}]   ;;  %s1866_s4 = inlined_call_operand.vmem [shape: f32[1,1,32], index: 4, kind: input, shape index: {}]   ;;  %s1867_s5 = inlined_call_operand.hbm [shape: f32[2,1,8,32], index: 5, kind: output, shape index: {}]  }
   0x1   :  { %12 = vsyncpa [#allocation3 + $0x1], 0 }
   0x2   :  { %13 = vsyncpa [#allocation6], 0 }
   0x3   :  { %14 = vsyncpa [#allocation4], 0 }
   0x4   :  { %16 = vsyncpa [#allocation4 + $0x1], 0  ;;  %s1535_s18 = smov 0   ;;  %s1537_s19 = smov 0  }
   0x5   :  { %s1539_s20 = smov 0   ;;  %s1541_s21 = smov 0  }
   0x6   :  { %s1543_s22 = smov 0   ;;  %s1545_s23 = smov 0  }
   0x7 LB: > { %s1067_s24 = sadd.s32 4294967295, %s1481_s23   ;;  %s1068_s25 = sadd.s32 4294967294, %s1481_s23   ;;  %s1481_s23 = sphi %s1545_s23, %s22_s23   ;;  %s1477_s22 = sphi %s1543_s22, %s1889_s22   ;;  %s1473_s21 = sphi %s1541_s21, %s1888_s21   ;;  %s1469_s20 = sphi %s1539_s20, %s1887_s20   ;;  %s1465_s19 = sphi %s1537_s19, %s1886_s19   ;;  %s1461_s18 = sphi %s1535_s18, %s1885_s18  }
   0x8   : > { %p54_p0 = scmp.ne.s32.totalorder %s1465_s19, %s1461_s18  ;;  %p1569_p1 = scmp.eq.s32.totalorder %s1067_s24, 0 }
   0x9   : > { %p1573_p2 = scmp.eq.s32.totalorder %s1067_s24, 1  ;;  %p190_p3 = scmp.eq.s32.totalorder %s1068_s25, 1 }
   0xa   : > { %s1872_s26 = scalar_select %p1569_p1, 1, 0 }
   0xb   : > { %p1579_p4 = por %p1569_p1, %p54_p0  ;;  %p1069_p5 = scmp.ge.s32.totalorder %s1481_s23, 1 }
   0xc   : > { %p1584_p6 = por %p190_p3, %p54_p0  ;;  %p197_p7 = scmp.lt.s32.totalorder %s1481_s23, 3 }
   0xd   : > { %s1874_s28 = scalar_select %p1579_p4, 1, 0 }
   0xe   : > { %s1875_s29 = scalar_select %p1584_p6, 1, 0 }
   0xf   : > { %p1589_p8 = pnand %p1069_p5, %p197_p7  ;;  %s1483_s6 = smov [#allocation5]  }
  0x10   : > { %s212_s7 = sshll.u32 %s1483_s6, 4  ;;  %s1484_s9 = smov [#allocation7]   ;;  %s1593_s7 = int_to_ptr.vmem [resolvable:$true] %s212_s7 }
  0x11   : > { %p1200_p9 = pneg %p1589_p8  ;;  %s234_s10 = sshll.u32 %s1484_s9, 4  ;;  %s1604_s10 = int_to_ptr.vmem [resolvable:$true] %s234_s10 }
  0x12   : > { %s1309_s13 = scalar_lea.hbm %s1863_s1, 256 }
  0x13   : > { %p1600_p11 = pnand %p1200_p9, %p1569_p1  ;;  %p1310_p12 = scmp.ne.s32.totalorder %s1863_s1, %s1309_s13 }
  0x14   : > { %p1316_p5 = scmp.lt.u32.totalorder %s1309_s13, %s1863_s1 }
  0x15   : > { %p1311_p13 = pneg %p1600_p11 }
  0x17   : > { %p1312_p0 = pnand %p1311_p13, %p1310_p12 }
  0x19   : > { %p1313_p3 = pneg %p1312_p0 }
  0x1b   : > { %p1318_p7 = pnand %p1316_p5, %p1313_p3 }
  0x1d   : > { %1321 = shalt.err (!%p1318_p7)
}
  0x1e   : > { %s1322_s24 = scalar_lea.vmem %s1593_s7, 256  ;;  %p1330_p1 = scmp.lt.s32.totalorder %s1593_s7, %s1593_s7 }
  0x1f   : > { %p1323_p9 = scmp.ne.s32.totalorder %s1593_s7, %s1322_s24  ;;  %p1331_p12 = scmp.lt.s32.totalorder %s1322_s24, %s1322_s24 }
  0x21   : > { %p1325_p10 = pnand %p1323_p9, %p1311_p13  ;;  %p1332_p0 = por %p1331_p12, %p1330_p1 }
  0x23   : > { %p1326_p6 = pneg %p1325_p10 }
  0x25   : > { %p1333_p4 = pnand %p1332_p0, %p1326_p6 }
  0x27   : > { %1336 = shalt.err (!%p1333_p4)
}
  0x28   : > { %s1485_s25 = smov 64   ;;  %s1486_s6 = smov 4  }
  0x29   : > { %1203 = dma.hbm_to_vmem [thread:$0]  (!%p1600_p11), %s1863_s1, 256, %s1593_s7, [#allocation6], %s1485_s25, %s1485_s25, %s1486_s6  }
  0x2a   : > { %s1337_s14 = scalar_lea.hbm %s1865_s3, 256 }
  0x2b   : > { %p1338_p1 = scmp.ne.s32.totalorder %s1865_s3, %s1337_s14  ;;  %p1344_p10 = scmp.lt.u32.totalorder %s1337_s14, %s1865_s3 }
  0x2d   : > { %p1340_p4 = pnand %p1338_p1, %p1311_p13 }
  0x2f   : > { %p1341_p6 = pneg %p1340_p4 }
  0x31   : > { %p1346_p3 = pnand %p1344_p10, %p1341_p6 }
  0x33   : > { %1349 = shalt.err (!%p1346_p3)
}
  0x34   : > { %s1350_s7 = scalar_lea.vmem %s1604_s10, 256  ;;  %p1358_p12 = scmp.lt.s32.totalorder %s1604_s10, %s1604_s10 }
  0x35   : > { %p1351_p5 = scmp.ne.s32.totalorder %s1604_s10, %s1350_s7  ;;  %p1359_p0 = scmp.lt.s32.totalorder %s1350_s7, %s1350_s7 }
  0x37   : > { %p1353_p7 = pnand %p1351_p5, %p1311_p13  ;;  %p1360_p1 = por %p1359_p0, %p1358_p12 }
  0x39   : > { %p1354_p9 = pneg %p1353_p7 }
  0x3b   : > { %p1361_p4 = pnand %p1360_p1, %p1354_p9 }
  0x3d   : > { %1364 = shalt.err (!%p1361_p4)
}
  0x3e   : > { %1206 = dma.hbm_to_vmem [thread:$0]  (!%p1600_p11), %s1865_s3, 256, %s1604_s10, [#allocation6], %s1485_s25, %s1485_s25, %s1486_s6  }
  0x3f   : > { %s34_s12 = sadd.s32 1, %s1477_s22  ;;  %s41_s13 = sadd.s32 1, %s1469_s20 }
  0x40   : > { %p36_p13 = scmp.ge.s32.totalorder %s34_s12, 2  ;;  %p48_p6 = scmp.ne.s32.totalorder %s1469_s20, %s1465_s19 }
  0x41   : > { %p49_p10 = scmp.eq.s32.totalorder %s1481_s23, 0  ;;  %p1217_p3 = scmp.lt.s32.totalorder %s1481_s23, 2 }
  0x42   : > { %s1891_s12 = smov (%p36_p13, %s34_s12), 0  ;;  %p1668_p7 = por %p1573_p2, %p48_p6 }
  0x43   : > { %p50_p5 = por %p49_p10, %p48_p6  ;;  %s38_s14 = ssub.s32 %s1477_s22, %s1891_s12 }
  0x44   : > { %s1878_s8 = scalar_select %p1668_p7, 1, 0 }
  0x45   : > { %s254_s15 = sand.u32 1, %s1469_s20   ;;  %p39_p9 = scmp.eq.s32.totalorder %s38_s14, 0 }
  0x46   : > { %s1075_s10 = sshll.u32 %s254_s15, 2  ;;  %s1076_s25 = sshll.u32 %s1477_s22, 6 }
  0x47   : > { %s1677_s6 = scalar_select %p39_p9, %s1469_s20, %s41_s13  }
  0x48   : > { %s1682_s24 = scalar_lea.hbm %s1862_s0, %s1076_s25  ;;  %s258_s27 = scalar_lea.vmem [#allocation2], %s1075_s10 }
  0x49   : > { %s265_s7 = sshll.u32 %s258_s27, 4  ;;  %p1686_p2 = pnand %p1217_p3, %p50_p5  ;;  %s1690_s7 = int_to_ptr.vmem [resolvable:$true] %s265_s7 }
  0x4a   : > { %s255_s11 = scalar_lea.sflag [#allocation3], %s254_s15  ;;  %s1365_s13 = scalar_lea.hbm %s1682_s24, 64 }
  0x4b   : > { %p1366_p11 = scmp.ne.s32.totalorder %s1682_s24, %s1365_s13  ;;  %p1367_p12 = pneg %p1686_p2 }
  0x4c   : > { %s1370_s25 = scalar_lea.hbm %s1862_s0, 128  ;;  %p1371_p4 = scmp.lt.u32.totalorder %s1682_s24, %s1862_s0 }
  0x4d   : > { %p1368_p0 = pnand %p1367_p12, %p1366_p11  ;;  %p1372_p13 = scmp.lt.u32.totalorder %s1370_s25, %s1365_s13 }
  0x4e   : > { %p1374_p10 = scmp.lt.u32.totalorder %s1365_s13, %s1682_s24 }
  0x4f   : > { %p1369_p1 = pneg %p1368_p0  ;;  %p1373_p6 = por %p1372_p13, %p1371_p4 }
  0x51   : > { %p1375_p3 = por %p1374_p10, %p1373_p6 }
  0x53   : > { %p1376_p5 = pnand %p1375_p3, %p1369_p1 }
  0x55   : > { %1379 = shalt.err (!%p1376_p5)
}
  0x56   : > { %s1380_s15 = scalar_lea.vmem %s1690_s7, 64  ;;  %s1487_s27 = smov [#allocation2]  }
  0x57   : > { %p1381_p9 = scmp.ne.s32.totalorder %s1690_s7, %s1380_s15  ;;  %s1385_s14 = sshll.u32 %s1487_s27, 4  ;;  %s1386_s14 = int_to_ptr.vmem [resolvable:$false] %s1385_s14 }
  0x58   : > { %s1387_s10 = scalar_lea.vmem %s1386_s14, 128  ;;  %p1388_p7 = scmp.lt.s32.totalorder %s1690_s7, %s1386_s14 }
  0x59   : > { %p1383_p11 = pnand %p1381_p9, %p1367_p12  ;;  %p1389_p4 = scmp.lt.s32.totalorder %s1387_s10, %s1380_s15 }
  0x5b   : > { %p1384_p0 = pneg %p1383_p11  ;;  %p1390_p13 = por %p1389_p4, %p1388_p7 }
  0x5d   : > { %p1391_p6 = pnand %p1390_p13, %p1384_p0 }
  0x5f   : > { %1394 = shalt.err (!%p1391_p6)
}
  0x60   : > { %1210 = dma.hbm_to_vmem [thread:$0]  (!%p1686_p2), %s1682_s24, 64, %s1690_s7, %s255_s11  }
  0x61   : > { %274 = sbr.rel (%p1589_p8) target bundleno = 1605 (0x645), region = 40  ;;  %s1720_s13 = sand.u32 (!%p1589_p8), 1, %s1465_s19  }
  0x62   : > { %s1078_s25 = sshll.u32 (!%p1589_p8), %s1720_s13, 2  ;;  %s277_s16 = scalar_lea.sflag (!%p1589_p8), [#allocation3], %s1720_s13 }
  0x63   : > { %s280_s17 = scalar_lea.vmem (!%p1589_p8), [#allocation2], %s1078_s25  ;;  %p1880_p7 = scmp.ne.s32.totalorder (!%p1589_p8), %s1874_s28, 0 }
  0x68   : > { %1448 = dma.done.wait (%p1880_p7), %s277_s16, 64  }
  0x69   : > { %1450 = vsyncadd (%p1880_p7), %s277_s16, 4294967232  ;;  %p1881_p12 = scmp.ne.s32.totalorder %s1872_s26, 0 }
  0x6b   : > { %1452 = dma.done.wait (%p1881_p12), [#allocation6], 512  }
  0x6c   : > { %1454 = vsyncadd (%p1881_p12), [#allocation6], 4294966784  ;;  %v1488_v0 = vmov 0.0   ;;  %vm1489_vm0 = vmmov 0   ;;  %v1289_v1 = vld [vmem:[#allocation5] sm:$0xff]   ;;  %v1290_v2 = vld [vmem:[#allocation5 + $0x8] sm:$0xff]  }
  0x6d   : > { %1124 = vmatprep.subr.bf16.mxu0 %v1488_v0  ;;  %1128 = vmatprep.mubr.msk.bf16.mxu0 %vm1489_vm0, %v1488_v0  ;;  %v328_v3 = vld [vmem:[%s280_s17] sm:$0xf]  ;;  %vm352_vm1 = vcmask 261120   ;;  %s1490_s30 = smov 96   ;;  %s1491_s24 = smov 120   ;;  %vm402_vm2 = vcmask 64512  }
  0x6e   : > { %1132 = vmatprep.subr.bf16.mxu1 %v1488_v0  ;;  %1134 = vmatprep.mubr.msk.bf16.mxu1 %vm1489_vm0, %v1488_v0  ;;  %v1082_v4 = vld [vmem:[%s1864_s2] ss:$0 sm:$0xff]  ;;  %s1492_s7 = smov 88   ;;  %s1493_s9 = smov 80   ;;  %vm466_vm3 = vcmask 1043456   ;;  %vm854_vm4 = vcmask 130048  }
  0x6f   : > { %1125 = vmatpush3.bf16.msra.mxu0 %v1289_v1  ;;  %s1494_s11 = smov 112   ;;  %s1495_s15 = smov 72   ;;  %vm856_vm5 = vcmask 195584  }
  0x70   : > { %1126 = vmatprep.subr.bf16.mxu0 %v1488_v0  ;;  %s1496_s27 = smov 104   ;;  %s1497_s14 = smov 56  }
  0x71   : > { %s1498_s10 = smov 64   ;;  %s1499_s25 = smov 40  }
  0x72   : > { %s1500_s16 = smov 48   ;;  %s1501_s17 = smov 8  }
  0x73   : > { %1127 = vmatpush3.bf16.msra.mxu0 %v1290_v2  ;;  %s1502_s26 = smov 16   ;;  %s1503_s28 = smov 24  }
  0x74   : > { %1138 = vmatprep.subr.bf16.mxu0 %v1488_v0  ;;  %p1882_p2 = scmp.ne.s32.totalorder %s1878_s8, 0 }
  0x76   : > { %1129 = vmatmul.mubr.msk.bf16.vlgmr.msra.gmra.mrb[0].mxu0 %vm352_vm1, %v328_v3 }
  0x77   : > { %1140 = vmatprep.mubr.msk.bf16.mxu0 %vm1489_vm0, %v1488_v0 }
 0x149   : > { %v390_v5 = vpop.f32.mrb[0].mxu0 }
 0x14a   : > { %v391_v6 = vadd.f32 %v1082_v4, %v390_v5  ;;  %v1130_v7 = vpop.f32.mrb[1].mxu0 }
 0x14b   : > { %v393_v8 = vpop.f32.mrb[2].mxu0 }
 0x14c   : > { %v396_v9 = vmul.f32 0.35355338, %v391_v6  ;;  %v1746_v10 = vpack.c.bf16 %v391_v6, %v391_v6  ;;  %v1131_v11 = vpop.f32.mrb[3].mxu0 }
 0x14e   : > { %v397_v12 = vpack.c.bf16 %v396_v9, %v396_v9  ;;  %400 = vrot.lane.b32.xlu0 %v1746_v10, %s1490_s30  ;;  %s1081_s30 = sshll.u32 %s1720_s13, 3 }
 0x150   : > { %511 = vrot.lane.b32.xlu1 %v397_v12, %s1491_s24 }
 0x152   : > { %513 = vrot.lane.b32.xlu0 %v1746_v10, %s1492_s7 }
 0x154   : > { %623 = vrot.lane.b32.xlu1 %v1746_v10, %s1493_s9  ;;  %s1099_s9 = sshll.u32 %s1473_s21, 7  ;;  %s927_s21 = scalar_lea.sflag [#allocation4], %s1720_s13 }
 0x156   : > { %621 = vrot.lane.b32.xlu0 %v397_v12, %s1494_s11  ;;  %s320_s11 = scalar_lea.vmem [#allocation8], %s1081_s30 }
 0x158   : > { %733 = vrot.lane.b32.xlu1 %v1746_v10, %s1495_s15  ;;  %s941_s15 = sshll.u32 %s320_s11, 4  ;;  %s1814_s15 = int_to_ptr.vmem [resolvable:$true] %s941_s15 }
 0x15a   : > { %731 = vrot.lane.b32.xlu0 %v397_v12, %s1496_s27 }
 0x1c0   : > { %v401_v13 = vpop.permute.xlu0 %400 }
 0x1c1   : > { %v407_v14 = vsel %vm402_vm2, %v401_v13, 0 }
 0x1c2   : > { %1133 = vmatpush3.bf16.xpose.msra.mxu1 %v407_v14  ;;  %v512_v16 = vpop.permute.xlu1 %511 }
 0x1c3   : > { %1144 = vmatprep.subr.bf16.mxu1 %v1488_v0 }
 0x1c4   : > { %v514_v15 = vpop.permute.xlu0 %513 }
 0x1c5   : > { %v519_v17 = vsel %vm402_vm2, %v514_v15, 0 }
 0x1c6   : > { %v624_v18 = vpop.permute.xlu1 %623 }
 0x1c7   : > { %v629_v19 = vsel %vm402_vm2, %v624_v18, 0 }
 0x1c8   : > { %v622_v21 = vpop.permute.xlu0 %621 }
 0x1c9   : > { %1135 = vmatmul.mubr.msk.bf16.vlgmr.msra.gmra.mrb[0].mxu1 %vm402_vm2, %v397_v12 }
 0x1ca   : > { %1145 = vmatpush3.bf16.xpose.msra.mxu1 %v519_v17  ;;  %1146 = vmatprep.mubr.msk.bf16.mxu1 %vm1489_vm0, %v1488_v0  ;;  %v734_v20 = vpop.permute.xlu1 %733 }
 0x1cb   : > { %1156 = vmatprep.subr.bf16.mxu1 %v1488_v0  ;;  %v739_v22 = vsel %vm402_vm2, %v734_v20, 0 }
 0x1cc   : > { %v732_v23 = vpop.permute.xlu0 %731 }
 0x1d1   : > { %1147 = vmatmul.mubr.msk.bf16.vlgmr.msra.gmra.mrb[4].mxu1 %vm402_vm2, %v512_v16 }
 0x1d2   : > { %1157 = vmatpush3.bf16.xpose.msra.mxu1 %v629_v19  ;;  %1158 = vmatprep.mubr.msk.bf16.mxu1 %vm1489_vm0, %v1488_v0 }
 0x1d3   : > { %1168 = vmatprep.subr.bf16.mxu1 %v1488_v0 }
 0x1d9   : > { %1159 = vmatmul.mubr.msk.bf16.vlgmr.msra.gmra.mrb[8].mxu1 %vm402_vm2, %v622_v21 }
 0x1da   : > { %1169 = vmatpush3.bf16.xpose.msra.mxu1 %v739_v22  ;;  %1170 = vmatprep.mubr.msk.bf16.mxu1 %vm1489_vm0, %v1488_v0 }
 0x1db   : > { %1180 = vmatprep.subr.bf16.mxu1 %v1488_v0 }
 0x1e1   : > { %1171 = vmatmul.mubr.msk.bf16.vlgmr.msra.gmra.mrb[12].mxu1 %vm402_vm2, %v732_v23 }
 0x1e2   : > { %1184 = vmatprep.mubr.msk.bf16.mxu1 %vm1489_vm0, %v1488_v0 }
 0x29c   : > { %v443_v24 = vpop.f32.mrb[0].mxu1 }
 0x29d   : > { %v1136_v25 = vpop.f32.mrb[1].mxu1  ;;  %v449_v26 = vsel %vm402_vm2, %v443_v24, -inf }
 0x29e   : > { %450 = vmax.xlane.f32.xlu1 %v449_v26  ;;  %v446_v27 = vpop.f32.mrb[2].mxu1 }
 0x29f   : > { %v1137_v28 = vpop.f32.mrb[3].mxu1 }
 0x2a4   : > { %v555_v29 = vpop.f32.mrb[4].mxu1 }
 0x2a5   : > { %v1148_v30 = vpop.f32.mrb[5].mxu1  ;;  %v561_v31 = vsel %vm402_vm2, %v555_v29, -inf }
 0x2a6   : > { %562 = vmax.xlane.f32.xlu0 %v561_v31  ;;  %v558_v32 = vpop.f32.mrb[6].mxu1 }
 0x2a7   : > { %v1149_v33 = vpop.f32.mrb[7].mxu1 }
 0x2a8   : > { %v1291_v33 = vld [vmem:[#allocation7] sm:$0xff]  }
 0x2a9   : > { %1181 = vmatpush3.bf16.msra.mxu1 %v1291_v33 }
 0x2aa   : > { %1182 = vmatprep.subr.bf16.mxu1 %v1488_v0 }
 0x2ac   : > { %v665_v34 = vpop.f32.mrb[8].mxu1 }
 0x2ad   : > { %v1160_v35 = vpop.f32.mrb[9].mxu1  ;;  %v671_v36 = vsel %vm402_vm2, %v665_v34, -inf }
 0x2ae   : > { %672 = vmax.xlane.f32.xlu0 %v671_v36  ;;  %v668_v37 = vpop.f32.mrb[10].mxu1 }
 0x2af   : > { %v1161_v38 = vpop.f32.mrb[11].mxu1 }
 0x2b4   : > { %v775_v39 = vpop.f32.mrb[12].mxu1 }
 0x2b5   : > { %v1172_v40 = vpop.f32.mrb[13].mxu1  ;;  %v781_v41 = vsel %vm402_vm2, %v775_v39, -inf }
 0x2b6   : > { %782 = vmax.xlane.f32.xlu1 %v781_v41  ;;  %v778_v42 = vpop.f32.mrb[14].mxu1 }
 0x2b7   : > { %v1173_v43 = vpop.f32.mrb[15].mxu1 }
 0x32b   : > { %v451_v44 = vpop.xlane.xlu1 %450 }
 0x32c   : > { %v452_v45 = vsub.f32 %v443_v24, %v451_v44 }
 0x32e   : > { %v453_v46 = vmul.f32 1.442695, %v452_v45 }
 0x330   : > { %1293 = vpow2.f32 %v453_v46 }
 0x333   : > { %v563_v47 = vpop.xlane.xlu0 %562 }
 0x334   : > { %v564_v48 = vsub.f32 %v555_v29, %v563_v47 }
 0x336   : > { %v565_v49 = vmul.f32 1.442695, %v564_v48 }
 0x338   : > { %1295 = vpow2.f32 %v565_v49  ;;  %v1094_v49 = vld [vmem:[%s1866_s4] ss:$0 sm:$0xff] }
 0x33a   : > { %v1294_v50 = vpop.eup %1293 }
 0x33b   : > { %v673_v51 = vpop.xlane.xlu0 %672  ;;  %v455_v52 = vsel %vm402_vm2, %v1294_v50, 0.0 }
 0x33c   : > { %v674_v53 = vsub.f32 %v665_v34, %v673_v51  ;;  %456 = vadd.xlane.f32.xlu0 %v455_v52  ;;  %v1292_v34 = vld [vmem:[#allocation7 + $0x8] sm:$0xff]  }
 0x33d   : > { %1183 = vmatpush3.bf16.msra.mxu1 %v1292_v34 }
 0x33e   : > { %v675_v54 = vmul.f32 1.442695, %v674_v53 }
 0x340   : > { %1297 = vpow2.f32 %v675_v54 }
 0x342   : > { %v1296_v55 = vpop.eup %1295 }
 0x343   : > { %v567_v56 = vsel %vm402_vm2, %v1296_v55, 0.0  ;;  %v783_v59 = vpop.xlane.xlu1 %782 }
 0x344   : > { %568 = vadd.xlane.f32.xlu1 %v567_v56  ;;  %v784_v60 = vsub.f32 %v775_v39, %v783_v59 }
 0x346   : > { %v785_v61 = vmul.f32 1.442695, %v784_v60 }
 0x348   : > { %1299 = vpow2.f32 %v785_v61 }
 0x34a   : > { %v1298_v57 = vpop.eup %1297 }
 0x34b   : > { %v677_v58 = vsel %vm402_vm2, %v1298_v57, 0.0 }
 0x34c   : > { %678 = vadd.xlane.f32.xlu0 %v677_v58 }
 0x352   : > { %v1300_v62 = vpop.eup %1299 }
 0x353   : > { %v787_v63 = vsel %vm402_vm2, %v1300_v62, 0.0 }
 0x355   : > { %573 = vrot.lane.b32.xlu1 %v1746_v10, %s1497_s14 }
 0x362   : > { %461 = vrot.lane.b32.xlu0 %v1746_v10, %s1498_s10  ;;  %s1812_s10 = scalar_lea.hbm %s1867_s5, %s1099_s9 }
 0x366   : > { %793 = vrot.lane.b32.xlu0 %v1746_v10, %s1499_s25  ;;  %s1395_s25 = scalar_lea.vmem %s1814_s15, 128 }
 0x367   : > { %p1396_p8 = scmp.ne.s32.totalorder %s1814_s15, %s1395_s25 }
 0x369   : > { %p1397_p1 = pnand %p1396_p8, %p1882_p2 }
 0x36b   : > { %p1398_p10 = pneg %p1397_p1 }
 0x379   : > { %788 = vadd.xlane.f32.xlu1 %v787_v63 }
 0x38a   : > { %683 = vrot.lane.b32.xlu1 %v1746_v10, %s1500_s16  ;;  %s1504_s16 = smov [#allocation8]  }
 0x3c9   : > { %v457_v1 = vpop.xlane.xlu0 %456 }
 0x3ca   : > { %1301 = vrcp.f32 %v457_v1 }
 0x3d1   : > { %v569_v2 = vpop.xlane.xlu1 %568 }
 0x3d2   : > { %1303 = vrcp.f32 %v569_v2 }
 0x3d4   : > { %v1302_v3 = vpop.eup %1301 }
 0x3d5   : > { %v459_v5 = vmul.f32 %v1302_v3, %v1294_v50  ;;  %v574_v8 = vpop.permute.xlu1 %573 }
 0x3d6   : > { %v579_v12 = vsel %vm466_vm3, %v574_v8, 0 }
 0x3d7   : > { %v460_v9 = vpack.c.bf16 %v459_v5, %v459_v5 }
 0x3d9   : > { %v679_v4 = vpop.xlane.xlu0 %678 }
 0x3da   : > { %1305 = vrcp.f32 %v679_v4 }
 0x3dc   : > { %v1304_v11 = vpop.eup %1303 }
 0x3dd   : > { %v462_v6 = vpop.permute.xlu0 %461  ;;  %v571_v10 = vmul.f32 %v1304_v11, %v1296_v55 }
 0x3de   : > { %v468_v7 = vsel %vm466_vm3, %v462_v6, 0 }
 0x3df   : > { %1139 = vmatpush3.bf16.msra.mxu0 %v468_v7  ;;  %v572_v13 = vpack.c.bf16 %v571_v10, %v571_v10 }
 0x3e0   : > { %1150 = vmatprep.subr.bf16.mxu0 %v1488_v0 }
 0x3e1   : > { %v794_v19 = vpop.permute.xlu0 %793 }
 0x3e2   : > { %1141 = vmatmul.mubr.msk.bf16.vlgmr.msra.gmra.mrb[4].mxu0 %vm402_vm2, %v460_v9  ;;  %v799_v21 = vsel %vm466_vm3, %v794_v19, 0 }
 0x3e3   : > { %1151 = vmatpush3.bf16.msra.mxu0 %v579_v12  ;;  %1152 = vmatprep.mubr.msk.bf16.mxu0 %vm1489_vm0, %v1488_v0 }
 0x3e4   : > { %1162 = vmatprep.subr.bf16.mxu0 %v1488_v0  ;;  %v1306_v14 = vpop.eup %1305 }
 0x3e5   : > { %v681_v16 = vmul.f32 %v1306_v14, %v1298_v57 }
 0x3e7   : > { %v682_v20 = vpack.c.bf16 %v681_v16, %v681_v16 }
 0x3ea   : > { %1153 = vmatmul.mubr.msk.bf16.vlgmr.msra.gmra.mrb[8].mxu0 %vm402_vm2, %v572_v13 }
 0x3eb   : > { %1164 = vmatprep.mubr.msk.bf16.mxu0 %vm1489_vm0, %v1488_v0 }
 0x406   : > { %v789_v15 = vpop.xlane.xlu1 %788 }
 0x407   : > { %1307 = vrcp.f32 %v789_v15 }
 0x40a   : > { %v684_v17 = vpop.permute.xlu1 %683 }
 0x40b   : > { %v689_v18 = vsel %vm466_vm3, %v684_v17, 0 }
 0x40c   : > { %1163 = vmatpush3.bf16.msra.mxu0 %v689_v18 }
 0x40d   : > { %1174 = vmatprep.subr.bf16.mxu0 %v1488_v0 }
 0x40f   : > { %1165 = vmatmul.mubr.msk.bf16.vlgmr.msra.gmra.mrb[12].mxu0 %vm402_vm2, %v682_v20 }
 0x410   : > { %1175 = vmatpush3.bf16.msra.mxu0 %v799_v21  ;;  %1176 = vmatprep.mubr.msk.bf16.mxu0 %vm1489_vm0, %v1488_v0 }
 0x411   : > { %v1308_v22 = vpop.eup %1307 }
 0x412   : > { %v791_v23 = vmul.f32 %v1308_v22, %v1300_v62 }
 0x414   : > { %v792_v24 = vpack.c.bf16 %v791_v23, %v791_v23 }
 0x417   : > { %1177 = vmatmul.mubr.msk.bf16.vlgmr.msra.gmra.mrb[16].mxu0 %vm402_vm2, %v792_v24 }
 0x4b5   : > { %v504_v25 = vpop.f32.mrb[4].mxu0 }
 0x4b6   : > { %v1142_v26 = vpop.f32.mrb[5].mxu0 }
 0x4b7   : > { %v507_v27 = vpop.f32.mrb[6].mxu0 }
 0x4b8   : > { %v1143_v28 = vpop.f32.mrb[7].mxu0 }
 0x4bd   : > { %v615_v29 = vpop.f32.mrb[8].mxu0 }
 0x4be   : > { %842 = vrot.lane.b32.xlu1 %v615_v29, %s1501_s17  ;;  %v1154_v30 = vpop.f32.mrb[9].mxu0  ;;  %s1399_s17 = sshll.u32 %s1504_s16, 4  ;;  %s1400_s17 = int_to_ptr.vmem [resolvable:$false] %s1399_s17 }
 0x4bf   : > { %v618_v31 = vpop.f32.mrb[10].mxu0  ;;  %p1402_p3 = scmp.lt.s32.totalorder %s1814_s15, %s1400_s17 }
 0x4c0   : > { %v1155_v32 = vpop.f32.mrb[11].mxu0 }
 0x4e2   : > { %v725_v35 = vpop.f32.mrb[12].mxu0 }
 0x4e3   : > { %846 = vrot.lane.b32.xlu0 %v725_v35, %s1502_s26  ;;  %v1166_v36 = vpop.f32.mrb[13].mxu0  ;;  %s1401_s26 = scalar_lea.vmem %s1400_s17, 256 }
 0x4e4   : > { %v728_v37 = vpop.f32.mrb[14].mxu0  ;;  %p1403_p5 = scmp.lt.s32.totalorder %s1401_s26, %s1395_s25 }
 0x4e5   : > { %v1167_v38 = vpop.f32.mrb[15].mxu0 }
 0x4e6   : > { %p1404_p9 = por %p1403_p5, %p1402_p3 }
 0x4e8   : > { %p1405_p11 = pnand %p1404_p9, %p1398_p10 }
 0x4ea   : > { %v835_v39 = vpop.f32.mrb[16].mxu0 }
 0x4eb   : > { %850 = vrot.lane.b32.xlu1 %v835_v39, %s1503_s28  ;;  %v1178_v40 = vpop.f32.mrb[17].mxu0 }
 0x4ec   : > { %v838_v41 = vpop.f32.mrb[18].mxu0 }
 0x4ed   : > { %v1179_v42 = vpop.f32.mrb[19].mxu0 }
 0x530   : > { %v843_v43 = vpop.permute.xlu1 %842 }
 0x531   : > { %v853_v0 = vsel %vm402_vm2, %v504_v25, %v843_v43 }
 0x555   : > { %v847_v44 = vpop.permute.xlu0 %846 }
 0x556   : > { %v855_v45 = vsel %vm854_vm4, %v853_v0, %v847_v44 }
 0x55d   : > { %v851_v46 = vpop.permute.xlu1 %850 }
 0x55e   : > { %v857_v47 = vsel %vm856_vm5, %v855_v45, %v851_v46 }
 0x55f   : > { %v858_v48 = vpack.c.bf16 %v857_v47, %v857_v47 }
 0x561   : > { %1185 = vmatmul.mubr.msk.bf16.vlgmr.msra.gmra.mrb[16].mxu1 %vm352_vm1, %v858_v48 }
 0x634   : > { %v919_v50 = vpop.f32.mrb[16].mxu1 }
 0x635   : > { %v920_v51 = vadd.f32 %v1094_v49, %v919_v50  ;;  %v1186_v52 = vpop.f32.mrb[17].mxu1 }
 0x636   : > { %v922_v53 = vpop.f32.mrb[18].mxu1 }
 0x637   : > { %v1187_v54 = vpop.f32.mrb[19].mxu1  ;;  %925 = vst.msk [vmem:[%s320_s11] sm:$0xff] %vm352_vm1, %v920_v51 }
 0x638   : > { %1408 = shalt.err (!%p1405_p11)
}
 0x639   : > { %s1409_s13 = scalar_lea.hbm %s1812_s10, 128  ;;  %s1413_s24 = scalar_lea.hbm %s1867_s5, 256 }
 0x63a   : > { %p1410_p0 = scmp.ne.s32.totalorder %s1812_s10, %s1409_s13  ;;  %p1414_p6 = scmp.lt.u32.totalorder %s1812_s10, %s1867_s5 }
 0x63b   : > { %p1415_p7 = scmp.lt.u32.totalorder %s1413_s24, %s1409_s13  ;;  %p1417_p8 = scmp.lt.u32.totalorder %s1409_s13, %s1812_s10 }
 0x63c   : > { %p1411_p4 = pnand %p1410_p0, %p1882_p2 }
 0x63d   : > { %p1416_p12 = por %p1415_p7, %p1414_p6 }
 0x63e   : > { %p1412_p13 = pneg %p1411_p4 }
 0x63f   : > { %p1418_p1 = por %p1417_p8, %p1416_p12 }
 0x641   : > { %p1419_p10 = pnand %p1418_p1, %p1412_p13 }
 0x643   : > { %1422 = shalt.err (!%p1419_p10)
}
 0x644   : > { %1198 = dma.vmem_to_hbm [thread:$0]  (%p1882_p2), %s1814_s15, 128, %s1812_s10, %s927_s21  }
 0x645 PF: > { %s953_s11 = sand.u32 1, %s1461_s18   ;;  %p1883_p3 = scmp.ne.s32.totalorder %s1875_s29, 0 }
 0x646   : > { %p1884_p5 = scmp.ge.s32.totalorder %s1481_s23, 2  ;;  %s954_s27 = scalar_lea.sflag [#allocation4], %s953_s11 }
 0x648   : > { %p1212_p9 = pnand %p1884_p5, %p1883_p3 }
 0x64a   : > { %1456 = dma.done.wait (!%p1212_p9), %s954_s27, 128  }
 0x64b   : > { %1458 = vsyncadd (!%p1212_p9), %s954_s27, 4294967168  ;;  %s22_s23 = sadd.s32 1, %s1481_s23   ;;  %s1885_s18 = smov %s1465_s19 }
 0x64c   : > { %p19_p11 = scmp.ge.s32.totalorder %s22_s23, 4   ;;  %s1886_s19 = smov %s1469_s20 }
 0x64d   : > { %s1887_s20 = smov %s1677_s6  ;;  %s1888_s21 = smov %s1477_s22 }
 0x64e   : > { %s1889_s22 = smov %s1891_s12  ;;  %21 = sbr.rel (!%p19_p11) target bundleno = 7 (0x7), region = 101 }
 0x655   :  { %959 = vsyncpa [#allocation3], 1 }
 0x656   :  { %961 = vsyncpa [#allocation3 + $0x1], 1 }
 0x657   :  { %962 = vsyncpa [#allocation6], 1 }
 0x658   :  { %963 = vsyncpa [#allocation4], 1 }
 0x659   :  { %965 = vsyncpa [#allocation4 + $0x1], 1 }

</bundles_post_ra>
